<compile_context>
chip_gen: v5e
topology: v5e:2x2
jax: 0.10.0
libtpu: 0.0.40
codegen_flags: <defaults>
</compile_context>

<pallas_src>
import functools

import numpy as np
import jax
import jax.numpy as jnp
from jax import lax
from jax.experimental import pallas as pl
from jax.experimental.pallas import tpu as pltpu

_LANE = 128  # packed (all-heads) feature width of the weight / output slabs


def _fused_kernel(x_ref, adj_ref, w_ref, c_ref, out_ref, *,
                  head_offsets, head_dims, tile_n, n):
    """All heads in one invocation; the grid axis (if >1) tiles output rows.

    x_ref   : (N, D_in)        node features           (VMEM-resident)
    adj_ref : (TILE_N, N)      adjacency rows of this tile
    w_ref   : (D_in, 128)      all head weights packed at column offsets
    c_ref   : (C_rows, D_in)   row 2h = W_h @ alpha_origin_h, 2h+1 = W_h @ alpha_h
    out_ref : (TILE_N, 128)    output rows (head columns packed, rest zero)
    """
    x_full = x_ref[...]
    adj = adj_ref[...]
    w = w_ref[...]
    c = c_ref[...]

    # Query rows owned by this tile.  With a single tile this is just x_full
    # (no dynamic slice is emitted at all).
    if tile_n == n:
        x_tile = x_full
    else:
        start = pl.multiple_of(pl.program_id(0) * tile_n, 8)
        x_tile = x_ref[pl.ds(start, tile_n), :]

    # One dense matmul gives mx for every head (zero-padded columns stay zero).
    mxall = jnp.dot(x_full, w, preferred_element_type=jnp.float32)     # (N, 128)

    mask = adj != 0.0
    col_idx = lax.broadcasted_iota(jnp.int32, (1, _LANE), 1)

    acc = jnp.zeros((tile_n, _LANE), jnp.float32)
    for h, (off, fh) in enumerate(zip(head_offsets, head_dims)):
        # coef1[i] = mx_h[i] . alpha_origin_h = x[i] . (W_h @ alpha_origin_h)
        coef1 = lax.dot_general(x_tile, c[2 * h:2 * h + 1, :],
                                (((1,), (1,)), ((), ())),
                                preferred_element_type=jnp.float32)     # (TILE_N, 1)
        # coef2[j] = mx_h[j] . alpha_h -> built directly as a (1, N) row
        coef2 = lax.dot_general(c[2 * h + 1:2 * h + 2, :], x_full,
                                (((1,), (1,)), ((), ())),
                                preferred_element_type=jnp.float32)     # (1, N)

        exponent = coef1 + coef2                                        # (TILE_N, N) VPU add

        # Numerically-stable masked softmax over each node's neighbourhood.
        # `* adj` is kept so weighted adjacency matrices remain supported.
        m = jnp.max(jnp.where(mask, exponent, -jnp.inf), axis=1, keepdims=True)
        scores = jnp.exp(jnp.where(mask, exponent - m, -jnp.inf)) * adj  # (TILE_N, N)
        denom = jnp.sum(scores, axis=1, keepdims=True)                   # (TILE_N, 1)
        # NOTE: zero-degree rows (denom == 0) produce NaN, matching the 0/0
        # of the reference.
        inv0 = pl.reciprocal(denom, approx=True)       # EUP slot
        inv = inv0 * (2.0 - denom * inv0)              # one Newton step -> f32 accuracy

        # (TILE_N, N) @ (N, 128): only head h's columns are kept by the mask;
        # the MXU is 128 lanes wide anyway, so this costs the same as the
        # narrow per-head matmul while avoiding narrow lane slices/stores.
        contrib = jnp.dot(scores, mxall, preferred_element_type=jnp.float32) * inv
        head_mask = (col_idx >= off) & (col_idx < off + fh)
        acc = jnp.where(head_mask, contrib, acc)

    out_ref[...] = acc.astype(out_ref.dtype)


def pack_params(weights, origins, alphas):
    """Host-side, done once: pack all heads into lane-dense slabs.

    Returns (w_packed (D_in,128), c_packed (C_rows,D_in), head_dims,
    head_offsets, sum_f).  Folding W @ alpha here removes the per-head alpha
    operand and its MXU pushes from the kernel.
    """
    weights = [np.asarray(w, np.float64) for w in weights]
    origins = [np.asarray(o, np.float64) for o in origins]
    alphas = [np.asarray(a, np.float64) for a in alphas]
    d_in = weights[0].shape[0]
    head_dims = tuple(int(w.shape[1]) for w in weights)
    offs = np.cumsum([0] + list(head_dims))
    head_offsets = tuple(int(o) for o in offs[:-1])
    sum_f = int(offs[-1])
    assert sum_f <= _LANE, "packed head width must fit a single 128-lane slab"
    h = len(weights)

    w_packed = np.zeros((d_in, _LANE), np.float32)
    c_rows = max(8, ((2 * h + 7) // 8) * 8)           # sublane-pad the coef rows
    c_packed = np.zeros((c_rows, d_in), np.float32)
    for i, (w, ao, al) in enumerate(zip(weights, origins, alphas)):
        w_packed[:, head_offsets[i]:head_offsets[i] + head_dims[i]] = w
        c_packed[2 * i] = w @ ao          # fold alpha_origin into the weights
        c_packed[2 * i + 1] = w @ al      # fold alpha into the weights
    return (jnp.asarray(w_packed), jnp.asarray(c_packed),
            head_dims, head_offsets, sum_f)


def _pick_row_tile(n):
    """Row tile for the N (output-row) grid axis; full N for toy graphs."""
    if n <= 512:
        return n
    for t in (512, 256, 128, 64, 32, 16, 8):
        if n % t == 0:
            return t
    return n


def make_layers_forward(n, d_in, head_dims, head_offsets, sum_f):
    tile_n = _pick_row_tile(n)
    num_tiles = n // tile_n
    n_heads = len(head_dims)
    c_rows = max(8, ((2 * n_heads + 7) // 8) * 8)

    kernel = functools.partial(_fused_kernel, head_offsets=head_offsets,
                               head_dims=head_dims, tile_n=tile_n, n=n)

    grid_spec = pltpu.PrefetchScalarGridSpec(
        num_scalar_prefetch=0,
        grid=(num_tiles,),
        in_specs=[
            pl.BlockSpec((n, d_in), lambda i: (0, 0)),        # x, resident
            pl.BlockSpec((tile_n, n), lambda i: (i, 0)),      # adj row tile
            pl.BlockSpec((d_in, _LANE), lambda i: (0, 0)),    # packed W, resident
            pl.BlockSpec((c_rows, d_in), lambda i: (0, 0)),   # packed W@alpha, resident
        ],
        out_specs=pl.BlockSpec((tile_n, _LANE), lambda i: (i, 0)),
    )

    cost = pl.CostEstimate(
        flops=(2 * n * d_in * _LANE * num_tiles
               + n_heads * (2 * n * n * _LANE + 8 * n * n)),
        transcendentals=n_heads * n * n,
        bytes_accessed=4 * (n * d_in + n * n + d_in * _LANE
                            + c_rows * d_in + n * _LANE),
    )

    call = pl.pallas_call(
        kernel,
        out_shape=jax.ShapeDtypeStruct((n, _LANE), jnp.float32),
        grid_spec=grid_spec,
        # Row tiles are independent -> "parallel" balances v7x's two TCs.
        # VMEM footprint is tiny here, so the default vmem limit is kept.
        compiler_params=pltpu.CompilerParams(
            dimension_semantics=("parallel",)),
        cost_estimate=cost,
    )

    @jax.jit
    def forward(x, adj, w_packed, c_packed):
        out_padded = call(x.astype(jnp.float32), adj.astype(jnp.float32),
                          w_packed, c_packed)
        # hstack of all heads == the leading sum_f packed columns.
        return out_padded[:, :sum_f]

    return forward


def reference_forward(x, adj, weights, origins, alphas):
    """Plain-NumPy (float64) mirror of the PyTorch forward (for verification)."""
    outs = []
    for w, ao, a in zip(weights, origins, alphas):
        mx = x @ w
        c1 = mx @ ao
        c2 = mx @ a
        scores = np.exp(c1[:, None] + c2[None, :]) * adj
        attn = scores / scores.sum(axis=1, keepdims=True)
        outs.append(attn @ mx)
    return np.hstack(outs)


if __name__ == "__main__":
    key = jax.random.PRNGKey(0)
    N = 8                 # number of graph nodes (x.size(0))
    in_features = 8
    out_features = 10
    headers_num = 3
    atom = out_features // headers_num               # 3
    last = atom + out_features % headers_num         # 4  (remainder -> last head)
    dims = [atom] * (headers_num - 1) + [last]

    keys = jax.random.split(key, 2 + 3 * headers_num)
    x = jax.random.normal(keys[0], (N, in_features), dtype=jnp.float32)
    adj = (jax.random.uniform(keys[1], (N, N)) > 0.5).astype(jnp.float32)
    adj = jnp.clip(adj + jnp.eye(N, dtype=jnp.float32), 0.0, 1.0)  # self loops

    # Deterministic parameter init. The torch module uses uniform(-dim, dim);
    # we use a small uniform scale so exp() stays well-conditioned in float32.
    scale = 0.1
    weights, origins, alphas = [], [], []
    kidx = 2
    for f in dims:
        weights.append(jax.random.uniform(keys[kidx], (in_features, f),
                                          minval=-scale, maxval=scale,
                                          dtype=jnp.float32)); kidx += 1
        origins.append(jax.random.uniform(keys[kidx], (f,),
                                          minval=-scale, maxval=scale,
                                          dtype=jnp.float32)); kidx += 1
        alphas.append(jax.random.uniform(keys[kidx], (f,),
                                         minval=-scale, maxval=scale,
                                         dtype=jnp.float32)); kidx += 1
    # TODO(synk): the module allocates a `bias` Parameter but never uses it in
    # forward(), so it is intentionally omitted from the kernel compute.

    # Parameter packing is hoisted out of the per-call forward (done once).
    w_packed, c_packed, head_dims, head_offsets, sum_f = pack_params(
        weights, origins, alphas)
    forward = make_layers_forward(N, in_features, head_dims, head_offsets, sum_f)

    out = forward(x, adj, w_packed, c_packed)
    out = jax.block_until_ready(out)

    ref = reference_forward(np.asarray(x, np.float64), np.asarray(adj, np.float64),
                            [np.asarray(w, np.float64) for w in weights],
                            [np.asarray(o, np.float64) for o in origins],
                            [np.asarray(a, np.float64) for a in alphas])
    assert out.shape == (N, out_features)
    np.testing.assert_allclose(np.asarray(out, np.float64), ref, rtol=2e-4, atol=2e-4)
    print("KERNEL_OK")
</pallas_src>

<mosaic_0001>
module attributes {stable_mosaic.version = 11 : i64} {
  func.func @_fused_kernel(%arg0: i32, %arg1: memref<8x8xf32, #tpu.memory_space<vmem>>, %arg2: memref<8x8xf32, #tpu.memory_space<vmem>>, %arg3: memref<8x128xf32, #tpu.memory_space<vmem>>, %arg4: memref<8x8xf32, #tpu.memory_space<vmem>>, %arg5: memref<8x128xf32, #tpu.memory_space<vmem>>) attributes {dimension_semantics = [#tpu.dimension_semantics<parallel>], iteration_bounds = array<i64: 1>, scalar_prefetch = 0 : i64, scratch_operands = 0 : i64, tpu.core_type = #tpu.core_type<tc>, window_params = [{pipeline_mode = #tpu.pipeline_mode<synchronous>, transform_indices = @transform_0, window_bounds = array<i64: 8, 8>}, {transform_indices = @transform_1, window_bounds = array<i64: 8, 8>}, {pipeline_mode = #tpu.pipeline_mode<synchronous>, transform_indices = @transform_2, window_bounds = array<i64: 8, 128>}, {pipeline_mode = #tpu.pipeline_mode<synchronous>, transform_indices = @transform_3, window_bounds = array<i64: 8, 8>}, {transform_indices = @transform_4, window_bounds = array<i64: 8, 128>}]} {
    %c0 = arith.constant 0 : index
    %c0_0 = arith.constant 0 : index
    %0 = vector.load %arg1[%c0, %c0_0] : memref<8x8xf32, #tpu.memory_space<vmem>>, vector<8x8xf32>
    %c0_1 = arith.constant 0 : index
    %c0_2 = arith.constant 0 : index
    %1 = vector.load %arg2[%c0_1, %c0_2] : memref<8x8xf32, #tpu.memory_space<vmem>>, vector<8x8xf32>
    %c0_3 = arith.constant 0 : index
    %c0_4 = arith.constant 0 : index
    %2 = vector.load %arg3[%c0_3, %c0_4] : memref<8x128xf32, #tpu.memory_space<vmem>>, vector<8x128xf32>
    %c0_5 = arith.constant 0 : index
    %c0_6 = arith.constant 0 : index
    %3 = vector.load %arg4[%c0_5, %c0_6] : memref<8x8xf32, #tpu.memory_space<vmem>>, vector<8x8xf32>
    %cst = arith.constant dense<0.000000e+00> : vector<8x128xf32>
    %4 = tpu.matmul %0, %2, %cst {dimension_numbers = #tpu.dot_dimension_numbers<[1], [0], [0], [1], [0, 0, 1, 1], [], []>} : vector<8x8xf32>, vector<8x128xf32>, vector<8x128xf32> -> vector<8x128xf32>
    %cst_7 = arith.constant 0.000000e+00 : f32
    %5 = vector.broadcast %cst_7 : f32 to vector<8x8xf32>
    %6 = arith.cmpf one, %1, %5 : vector<8x8xf32>
    %7 = tpu.iota {dimensions = array<i32: 1>} : vector<1x128xi32>
    %cst_8 = arith.constant 0.000000e+00 : f32
    %8 = vector.broadcast %cst_8 : f32 to vector<8x128xf32>
    %9 = vector.extract_strided_slice %3 {offsets = [0, 0], sizes = [1, 8], strides = [1, 1]} : vector<8x8xf32> to vector<1x8xf32>
    %cst_9 = arith.constant dense<0.000000e+00> : vector<8x1xf32>
    %10 = tpu.matmul %0, %9, %cst_9 {dimension_numbers = #tpu.dot_dimension_numbers<[1], [1], [0], [0], [0, 0, 1, 0], [], []>} : vector<8x8xf32>, vector<1x8xf32>, vector<8x1xf32> -> vector<8x1xf32>
    %11 = vector.extract_strided_slice %3 {offsets = [1, 0], sizes = [1, 8], strides = [1, 1]} : vector<8x8xf32> to vector<1x8xf32>
    %cst_10 = arith.constant dense<0.000000e+00> : vector<1x8xf32>
    %12 = tpu.matmul %11, %0, %cst_10 {dimension_numbers = #tpu.dot_dimension_numbers<[1], [1], [0], [0], [0, 0, 1, 0], [], []>} : vector<1x8xf32>, vector<8x8xf32>, vector<1x8xf32> -> vector<1x8xf32>
    %13 = vector.broadcast %10 : vector<8x1xf32> to vector<8x8xf32>
    %14 = vector.broadcast %12 : vector<1x8xf32> to vector<8x8xf32>
    %15 = arith.addf %13, %14 : vector<8x8xf32>
    %cst_11 = arith.constant 0xFF800000 : f32
    %16 = vector.broadcast %cst_11 : f32 to vector<8x8xf32>
    %17 = arith.select %6, %15, %16 : vector<8x8xi1>, vector<8x8xf32>
    %cst_12 = arith.constant dense<0xFF800000> : vector<8xf32>
    %18 = vector.multi_reduction <maximumf>, %17, %cst_12 [1] : vector<8x8xf32> to vector<8xf32>
    %19 = vector.shape_cast %18 : vector<8xf32> to vector<8x1xf32>
    %20 = vector.broadcast %19 : vector<8x1xf32> to vector<8x8xf32>
    %21 = arith.subf %15, %20 : vector<8x8xf32>
    %cst_13 = arith.constant 0xFF800000 : f32
    %22 = vector.broadcast %cst_13 : f32 to vector<8x8xf32>
    %23 = arith.select %6, %21, %22 : vector<8x8xi1>, vector<8x8xf32>
    %24 = math.exp %23 : vector<8x8xf32>
    %25 = arith.mulf %24, %1 : vector<8x8xf32>
    %cst_14 = arith.constant dense<0.000000e+00> : vector<8xf32>
    %26 = vector.multi_reduction <add>, %25, %cst_14 [1] : vector<8x8xf32> to vector<8xf32>
    %27 = vector.shape_cast %26 : vector<8xf32> to vector<8x1xf32>
    %28 = tpu.reciprocal %27 {approx = true} : vector<8x1xf32> -> vector<8x1xf32>
    %29 = arith.mulf %27, %28 : vector<8x1xf32>
    %cst_15 = arith.constant 2.000000e+00 : f32
    %30 = vector.broadcast %cst_15 : f32 to vector<8x1xf32>
    %31 = arith.subf %30, %29 : vector<8x1xf32>
    %32 = arith.mulf %28, %31 : vector<8x1xf32>
    %cst_16 = arith.constant dense<0.000000e+00> : vector<8x128xf32>
    %33 = tpu.matmul %25, %4, %cst_16 {dimension_numbers = #tpu.dot_dimension_numbers<[1], [0], [0], [1], [0, 0, 1, 1], [], []>} : vector<8x8xf32>, vector<8x128xf32>, vector<8x128xf32> -> vector<8x128xf32>
    %34 = vector.broadcast %32 : vector<8x1xf32> to vector<8x128xf32>
    %35 = arith.mulf %33, %34 : vector<8x128xf32>
    %c0_i32 = arith.constant 0 : i32
    %36 = vector.broadcast %c0_i32 : i32 to vector<1x128xi32>
    %37 = arith.cmpi sge, %7, %36 : vector<1x128xi32>
    %c3_i32 = arith.constant 3 : i32
    %38 = vector.broadcast %c3_i32 : i32 to vector<1x128xi32>
    %39 = arith.cmpi slt, %7, %38 : vector<1x128xi32>
    %40 = arith.andi %37, %39 : vector<1x128xi1>
    %41 = vector.shape_cast %40 : vector<1x128xi1> to vector<1x128xi1>
    %42 = vector.broadcast %41 : vector<1x128xi1> to vector<8x128xi1>
    %43 = arith.select %42, %35, %8 : vector<8x128xi1>, vector<8x128xf32>
    %44 = vector.extract_strided_slice %3 {offsets = [2, 0], sizes = [1, 8], strides = [1, 1]} : vector<8x8xf32> to vector<1x8xf32>
    %cst_17 = arith.constant dense<0.000000e+00> : vector<8x1xf32>
    %45 = tpu.matmul %0, %44, %cst_17 {dimension_numbers = #tpu.dot_dimension_numbers<[1], [1], [0], [0], [0, 0, 1, 0], [], []>} : vector<8x8xf32>, vector<1x8xf32>, vector<8x1xf32> -> vector<8x1xf32>
    %46 = vector.extract_strided_slice %3 {offsets = [3, 0], sizes = [1, 8], strides = [1, 1]} : vector<8x8xf32> to vector<1x8xf32>
    %cst_18 = arith.constant dense<0.000000e+00> : vector<1x8xf32>
    %47 = tpu.matmul %46, %0, %cst_18 {dimension_numbers = #tpu.dot_dimension_numbers<[1], [1], [0], [0], [0, 0, 1, 0], [], []>} : vector<1x8xf32>, vector<8x8xf32>, vector<1x8xf32> -> vector<1x8xf32>
    %48 = vector.broadcast %45 : vector<8x1xf32> to vector<8x8xf32>
    %49 = vector.broadcast %47 : vector<1x8xf32> to vector<8x8xf32>
    %50 = arith.addf %48, %49 : vector<8x8xf32>
    %cst_19 = arith.constant 0xFF800000 : f32
    %51 = vector.broadcast %cst_19 : f32 to vector<8x8xf32>
    %52 = arith.select %6, %50, %51 : vector<8x8xi1>, vector<8x8xf32>
    %cst_20 = arith.constant dense<0xFF800000> : vector<8xf32>
    %53 = vector.multi_reduction <maximumf>, %52, %cst_20 [1] : vector<8x8xf32> to vector<8xf32>
    %54 = vector.shape_cast %53 : vector<8xf32> to vector<8x1xf32>
    %55 = vector.broadcast %54 : vector<8x1xf32> to vector<8x8xf32>
    %56 = arith.subf %50, %55 : vector<8x8xf32>
    %cst_21 = arith.constant 0xFF800000 : f32
    %57 = vector.broadcast %cst_21 : f32 to vector<8x8xf32>
    %58 = arith.select %6, %56, %57 : vector<8x8xi1>, vector<8x8xf32>
    %59 = math.exp %58 : vector<8x8xf32>
    %60 = arith.mulf %59, %1 : vector<8x8xf32>
    %cst_22 = arith.constant dense<0.000000e+00> : vector<8xf32>
    %61 = vector.multi_reduction <add>, %60, %cst_22 [1] : vector<8x8xf32> to vector<8xf32>
    %62 = vector.shape_cast %61 : vector<8xf32> to vector<8x1xf32>
    %63 = tpu.reciprocal %62 {approx = true} : vector<8x1xf32> -> vector<8x1xf32>
    %64 = arith.mulf %62, %63 : vector<8x1xf32>
    %cst_23 = arith.constant 2.000000e+00 : f32
    %65 = vector.broadcast %cst_23 : f32 to vector<8x1xf32>
    %66 = arith.subf %65, %64 : vector<8x1xf32>
    %67 = arith.mulf %63, %66 : vector<8x1xf32>
    %cst_24 = arith.constant dense<0.000000e+00> : vector<8x128xf32>
    %68 = tpu.matmul %60, %4, %cst_24 {dimension_numbers = #tpu.dot_dimension_numbers<[1], [0], [0], [1], [0, 0, 1, 1], [], []>} : vector<8x8xf32>, vector<8x128xf32>, vector<8x128xf32> -> vector<8x128xf32>
    %69 = vector.broadcast %67 : vector<8x1xf32> to vector<8x128xf32>
    %70 = arith.mulf %68, %69 : vector<8x128xf32>
    %c3_i32_25 = arith.constant 3 : i32
    %71 = vector.broadcast %c3_i32_25 : i32 to vector<1x128xi32>
    %72 = arith.cmpi sge, %7, %71 : vector<1x128xi32>
    %c6_i32 = arith.constant 6 : i32
    %73 = vector.broadcast %c6_i32 : i32 to vector<1x128xi32>
    %74 = arith.cmpi slt, %7, %73 : vector<1x128xi32>
    %75 = arith.andi %72, %74 : vector<1x128xi1>
    %76 = vector.shape_cast %75 : vector<1x128xi1> to vector<1x128xi1>
    %77 = vector.broadcast %76 : vector<1x128xi1> to vector<8x128xi1>
    %78 = arith.select %77, %70, %43 : vector<8x128xi1>, vector<8x128xf32>
    %79 = vector.extract_strided_slice %3 {offsets = [4, 0], sizes = [1, 8], strides = [1, 1]} : vector<8x8xf32> to vector<1x8xf32>
    %cst_26 = arith.constant dense<0.000000e+00> : vector<8x1xf32>
    %80 = tpu.matmul %0, %79, %cst_26 {dimension_numbers = #tpu.dot_dimension_numbers<[1], [1], [0], [0], [0, 0, 1, 0], [], []>} : vector<8x8xf32>, vector<1x8xf32>, vector<8x1xf32> -> vector<8x1xf32>
    %81 = vector.extract_strided_slice %3 {offsets = [5, 0], sizes = [1, 8], strides = [1, 1]} : vector<8x8xf32> to vector<1x8xf32>
    %cst_27 = arith.constant dense<0.000000e+00> : vector<1x8xf32>
    %82 = tpu.matmul %81, %0, %cst_27 {dimension_numbers = #tpu.dot_dimension_numbers<[1], [1], [0], [0], [0, 0, 1, 0], [], []>} : vector<1x8xf32>, vector<8x8xf32>, vector<1x8xf32> -> vector<1x8xf32>
    %83 = vector.broadcast %80 : vector<8x1xf32> to vector<8x8xf32>
    %84 = vector.broadcast %82 : vector<1x8xf32> to vector<8x8xf32>
    %85 = arith.addf %83, %84 : vector<8x8xf32>
    %cst_28 = arith.constant 0xFF800000 : f32
    %86 = vector.broadcast %cst_28 : f32 to vector<8x8xf32>
    %87 = arith.select %6, %85, %86 : vector<8x8xi1>, vector<8x8xf32>
    %cst_29 = arith.constant dense<0xFF800000> : vector<8xf32>
    %88 = vector.multi_reduction <maximumf>, %87, %cst_29 [1] : vector<8x8xf32> to vector<8xf32>
    %89 = vector.shape_cast %88 : vector<8xf32> to vector<8x1xf32>
    %90 = vector.broadcast %89 : vector<8x1xf32> to vector<8x8xf32>
    %91 = arith.subf %85, %90 : vector<8x8xf32>
    %cst_30 = arith.constant 0xFF800000 : f32
    %92 = vector.broadcast %cst_30 : f32 to vector<8x8xf32>
    %93 = arith.select %6, %91, %92 : vector<8x8xi1>, vector<8x8xf32>
    %94 = math.exp %93 : vector<8x8xf32>
    %95 = arith.mulf %94, %1 : vector<8x8xf32>
    %cst_31 = arith.constant dense<0.000000e+00> : vector<8xf32>
    %96 = vector.multi_reduction <add>, %95, %cst_31 [1] : vector<8x8xf32> to vector<8xf32>
    %97 = vector.shape_cast %96 : vector<8xf32> to vector<8x1xf32>
    %98 = tpu.reciprocal %97 {approx = true} : vector<8x1xf32> -> vector<8x1xf32>
    %99 = arith.mulf %97, %98 : vector<8x1xf32>
    %cst_32 = arith.constant 2.000000e+00 : f32
    %100 = vector.broadcast %cst_32 : f32 to vector<8x1xf32>
    %101 = arith.subf %100, %99 : vector<8x1xf32>
    %102 = arith.mulf %98, %101 : vector<8x1xf32>
    %cst_33 = arith.constant dense<0.000000e+00> : vector<8x128xf32>
    %103 = tpu.matmul %95, %4, %cst_33 {dimension_numbers = #tpu.dot_dimension_numbers<[1], [0], [0], [1], [0, 0, 1, 1], [], []>} : vector<8x8xf32>, vector<8x128xf32>, vector<8x128xf32> -> vector<8x128xf32>
    %104 = vector.broadcast %102 : vector<8x1xf32> to vector<8x128xf32>
    %105 = arith.mulf %103, %104 : vector<8x128xf32>
    %c6_i32_34 = arith.constant 6 : i32
    %106 = vector.broadcast %c6_i32_34 : i32 to vector<1x128xi32>
    %107 = arith.cmpi sge, %7, %106 : vector<1x128xi32>
    %c10_i32 = arith.constant 10 : i32
    %108 = vector.broadcast %c10_i32 : i32 to vector<1x128xi32>
    %109 = arith.cmpi slt, %7, %108 : vector<1x128xi32>
    %110 = arith.andi %107, %109 : vector<1x128xi1>
    %111 = vector.shape_cast %110 : vector<1x128xi1> to vector<1x128xi1>
    %112 = vector.broadcast %111 : vector<1x128xi1> to vector<8x128xi1>
    %113 = arith.select %112, %105, %78 : vector<8x128xi1>, vector<8x128xf32>
    %c0_35 = arith.constant 0 : index
    %c0_36 = arith.constant 0 : index
    %114 = vector.load %arg5[%c0_35, %c0_36] : memref<8x128xf32, #tpu.memory_space<vmem>>, vector<8x128xf32>
    tpu.vector_store %arg5[%c0_35, %c0_36], %113 {strides = array<i32>} : memref<8x128xf32, #tpu.memory_space<vmem>>, vector<8x128xf32>,
    return
  }
  func.func @transform_0(%arg0: i32) -> (i32, i32) {
    %c0_i32 = arith.constant 0 : i32
    %c0_i32_0 = arith.constant 0 : i32
    %c0_i32_1 = arith.constant 0 : i32
    return %c0_i32, %c0_i32_0 : i32, i32
  }
  func.func @transform_1(%arg0: i32) -> (i32, i32) {
    %c0_i32 = arith.constant 0 : i32
    %c0_i32_0 = arith.constant 0 : i32
    return %arg0, %c0_i32 : i32, i32
  }
  func.func @transform_2(%arg0: i32) -> (i32, i32) {
    %c0_i32 = arith.constant 0 : i32
    %c0_i32_0 = arith.constant 0 : i32
    %c0_i32_1 = arith.constant 0 : i32
    return %c0_i32, %c0_i32_0 : i32, i32
  }
  func.func @transform_3(%arg0: i32) -> (i32, i32) {
    %c0_i32 = arith.constant 0 : i32
    %c0_i32_0 = arith.constant 0 : i32
    %c0_i32_1 = arith.constant 0 : i32
    return %c0_i32, %c0_i32_0 : i32, i32
  }
  func.func @transform_4(%arg0: i32) -> (i32, i32) {
    %c0_i32 = arith.constant 0 : i32
    %c0_i32_0 = arith.constant 0 : i32
    return %arg0, %c0_i32 : i32, i32
  }
}

</mosaic_0001>

<bundles_post_ra>
// kernel: forward.1
= control target key start
LH: loop header
LB: loop body
LE: loop exit
PB: predicated region body
PF: predicated region fallthrough
CT: control target
= control target key end

     0   :  { %9 = vsyncpa [#allocation3], 0  ;;  %s586_s0 = inlined_call_operand.hbm [shape: f32[8,8], index: 0, kind: input, shape index: {}]   ;;  %s587_s1 = inlined_call_operand.hbm [shape: f32[8,8], index: 1, kind: input, shape index: {}]   ;;  %s588_s2 = inlined_call_operand.hbm [shape: f32[8,128], index: 2, kind: input, shape index: {}]   ;;  %s589_s3 = inlined_call_operand.hbm [shape: f32[8,8], index: 3, kind: input, shape index: {}]   ;;  %s590_s4 = inlined_call_operand.hbm [shape: f32[8,128], index: 4, kind: output, shape index: {}]  }
   0x1   :  { %10 = vsyncpa [#allocation6], 0 }
   0x2   :  { %11 = vsyncpa [#allocation9], 0  ;;  %s29_s17 = sshll.u32 %s587_s1, 4  ;;  %s30_s17 = int_to_ptr.hbm [resolvable:$true] %s29_s17 }
   0x3   :  { %12 = vsyncpa [#allocation4], 0  ;;  %s508_s18 = smov [#allocation5]   ;;  %s18_s22 = sshll.u32 %s586_s0, 4  ;;  %s19_s22 = int_to_ptr.hbm [resolvable:$true] %s18_s22 }
   0x4   :  { %s31_s19 = sshll.u32 %s508_s18, 4  ;;  %s509_s23 = smov [#allocation2]   ;;  %s32_s19 = int_to_ptr.vmem [resolvable:$true] %s31_s19 }
   0x5   :  { %34 = dma.hbm_to_vmem [thread:$0]  %s30_s17, 128, %s32_s19, [#allocation6]  }
   0x6   :  { %s20_s24 = sshll.u32 %s509_s23, 4  ;;  %s40_s27 = sshll.u32 %s588_s2, 4  ;;  %s21_s24 = int_to_ptr.vmem [resolvable:$true] %s20_s24  ;;  %s41_s27 = int_to_ptr.hbm [resolvable:$true] %s40_s27 }
   0x7   :  { %23 = dma.hbm_to_vmem [thread:$0]  %s19_s22, 128, %s21_s24, [#allocation3]  }
   0x8   :  { %s51_s29 = sshll.u32 %s589_s3, 4  ;;  %s510_s30 = smov [#allocation7]   ;;  %s52_s29 = int_to_ptr.hbm [resolvable:$true] %s51_s29 }
   0x9   :  { %s42_s5 = sshll.u32 %s510_s30, 4  ;;  %s511_s0 = smov [#allocation8]   ;;  %s43_s5 = int_to_ptr.vmem [resolvable:$true] %s42_s5 }
   0xa   :  { %45 = dma.hbm_to_vmem [thread:$0]  %s41_s27, 128, %s43_s5, [#allocation6]  }
   0xb   :  { %s53_s6 = sshll.u32 %s511_s0, 4  ;;  %s54_s6 = int_to_ptr.vmem [resolvable:$true] %s53_s6 }
   0xc   :  { %56 = dma.hbm_to_vmem [thread:$0]  %s52_s29, 128, %s54_s6, [#allocation9]  }
   0xd   :  { %500 = dma.done.wait [#allocation3], 128  }
   0xe   :  { %501 = vsyncadd [#allocation3], 4294967168 }
   0xf   :  { %502 = dma.done.wait [#allocation6], 256  }
  0x10   :  { %503 = vsyncadd [#allocation6], 4294967040 }
  0x11   :  { %504 = dma.done.wait [#allocation9], 128  }
  0x12   :  { %505 = vsyncadd [#allocation9], 4294967168  ;;  %vm77_vm0 = vcmask 64512   ;;  %v73_v0 = vld [vmem:[#allocation2] sm:$0xff]  ;;  %v550_v1 = vld [vmem:[#allocation8] sm:$0xff]  ;;  %s512_s2 = smov [#allocation10]  }
  0x13   :  { %354 = vmatpush.xpose.msk.msra.mxu1 %vm77_vm0, %v73_v0  ;;  %357 = vmatpush.xpose.msk.msra.mxu3 %vm77_vm0, %v73_v0  ;;  %v110_v2 = vrot.slane %v550_v1, 1  ;;  %v186_v3 = vrot.slane %v550_v1, 3  ;;  %v104_v4 = vperm.slane %v550_v1, 0  ;;  %v181_v5 = vperm.slane %v550_v1, 2  ;;  %v75_v10 = vld [vmem:[#allocation7] sm:$0xff]  ;;  %v74_v11 = vld [vmem:[#allocation5] sm:$0xff] }
  0x14   :  { %96 = vmatpush.msra.mxu0 %v75_v10  ;;  %vm101_vm1 = vcmp.ne.f32.partialorder %v74_v11, 0.0  ;;  %v257_v24 = vperm.slane %v550_v1, 4  ;;  %v262_v41 = vrot.slane %v550_v1, 5  ;;  %v102_v1 = vlaneseq  ;;  %s339_s3 = sshll.u32 %s512_s2, 4  ;;  %s341_s9 = sshll.u32 %s590_s4, 4  ;;  %s340_s3 = int_to_ptr.vmem [resolvable:$true] %s339_s3  ;;  %s342_s9 = int_to_ptr.hbm [resolvable:$true] %s341_s9 }
  0x15   :  { %v105_v6 = vmul.f32 %v104_v4, %v73_v0  ;;  %v182_v7 = vmul.f32 %v181_v5, %v73_v0  ;;  %353 = vmatmul.msk.f32.vlgmr.msra.gmra.mxu0 %vm77_vm0, %v73_v0 }
  0x16   :  { %355 = vmatmul.msk.f32.vlgmr.msra.gmra.mxu1 %vm77_vm0, %v110_v2  ;;  %358 = vmatmul.msk.f32.vlgmr.msra.gmra.mxu3 %vm77_vm0, %v186_v3  ;;  %v258_v25 = vmul.f32 %v257_v24, %v73_v0  ;;  %v103_v4 = vand.u32 127, %v102_v1 }
  0x17   :  { %v106_v8 = vsel %vm77_vm0, %v105_v6, 0.0  ;;  %v183_v9 = vsel %vm77_vm0, %v182_v7, 0.0 }
  0x18   :  { %107 = vadd.xlane.f32.xlu0 %v106_v8  ;;  %184 = vadd.xlane.f32.xlu1 %v183_v9  ;;  %v259_v27 = vsel %vm77_vm0, %v258_v25, 0.0  ;;  %vm251_vm2 = vcmp.ge.s32.totalorder %v103_v4, 3  ;;  %vm252_vm3 = vcmp.lt.s32.totalorder %v103_v4, 6  ;;  %vm327_vm4 = vcmp.ge.s32.totalorder %v103_v4, 6 }
  0x19   :  { %vm328_vm5 = vcmp.lt.s32.totalorder %v103_v4, 10  ;;  %vm176_vm6 = vcmp.lt.s32.totalorder %v103_v4, 3  ;;  %vm253_vm7 = vmand %vm251_vm2, %vm252_vm3 }
  0x1a   :  { %vm329_vm8 = vmand %vm327_vm4, %vm328_vm5 }
  0x20   :  { %260 = vadd.xlane.f32.xlu1 %v259_v27 }
  0x8b   :  { %v108_v13 = vpop.xlane.xlu0 %107  ;;  %v185_v19 = vpop.xlane.xlu1 %184 }
  0x92   :  { %v98_v26 = vpop.f32.mrf.mxu0 }
  0x93   :  { %v130_v12 = vpop.f32.mrf.mxu1  ;;  %169 = vmatpush.msra.mxu2 %v98_v26  ;;  %245 = vmatpush.msrb.mxu0 %v98_v26  ;;  %v261_v46 = vpop.xlane.xlu1 %260 }
  0x94   :  { %v133_v14 = vperm.slane %v130_v12, 0  ;;  %321 = vmatpush.msrb.mxu1 %v98_v26 }
  0x95   :  { %360 = vmatpush.xpose.msk.msrb.mxu2 %vm77_vm0, %v73_v0 }
  0x96   :  { %v134_v15 = vadd.f32 %v133_v14, %v108_v13 }
  0x98   :  { %v135_v16 = vsel %vm101_vm1, %v134_v15, -inf }
  0x99   :  { %v206_v17 = vpop.f32.mrf.mxu3  ;;  %v136_v18 = vsel %vm77_vm0, %v135_v16, -inf }
  0x9a   :  { %v209_v20 = vperm.slane %v206_v17, 0  ;;  %137 = vmax.xlane.f32.xlu0 %v136_v18 }
  0x9c   :  { %v210_v21 = vadd.f32 %v209_v20, %v185_v19 }
  0x9e   :  { %v211_v22 = vsel %vm101_vm1, %v210_v21, -inf }
  0x9f   :  { %v212_v23 = vsel %vm77_vm0, %v211_v22, -inf }
  0xa0   :  { %213 = vmax.xlane.f32.xlu2 %v212_v23 }
 0x10d   :  { %v138_v28 = vpop.xlane.xlu0 %137 }
 0x10e   :  { %v139_v29 = vsub.f32 %v134_v15, %v138_v28 }
 0x110   :  { %v140_v30 = vsel %vm101_vm1, %v139_v29, -inf }
 0x111   :  { %v141_v31 = vmul.f32 1.442695, %v140_v30 }
 0x113   :  { %368 = vpow2.f32 %v141_v31  ;;  %v214_v32 = vpop.xlane.xlu2 %213 }
 0x114   :  { %v215_v33 = vsub.f32 %v210_v21, %v214_v32 }
 0x116   :  { %v216_v34 = vsel %vm101_vm1, %v215_v33, -inf }
 0x117   :  { %v217_v35 = vmul.f32 1.442695, %v216_v34 }
 0x119   :  { %v369_v36 = vpop.eup %368  ;;  %370 = vpow2.f32 %v217_v35 }
 0x11a   :  { %v143_v37 = vmul.f32 %v369_v36, %v74_v11 }
 0x11c   :  { %356 = vmatmul.msk.f32.vlgmr.msra.gmra.mxu2 %vm77_vm0, %v143_v37  ;;  %v144_v38 = vsel %vm77_vm0, %v143_v37, 0.0 }
 0x11d   :  { %145 = vadd.xlane.f32.xlu0 %v144_v38 }
 0x11f   :  { %v371_v39 = vpop.eup %370 }
 0x120   :  { %v219_v40 = vmul.f32 %v371_v39, %v74_v11 }
 0x122   :  { %v220_v42 = vsel %vm77_vm0, %v219_v40, 0.0  ;;  %359 = vmatmul.msk.f32.vlgmr.msrb.gmra.mxu0 %vm77_vm0, %v219_v40 }
 0x123   :  { %221 = vadd.xlane.f32.xlu1 %v220_v42 }
 0x124   :  { %361 = vmatmul.msk.f32.vlgmr.msrb.gmra.mxu2 %vm77_vm0, %v262_v41 }
 0x190   :  { %v146_v58 = vpop.xlane.xlu0 %145 }
 0x196   :  { %v222_v57 = vpop.xlane.xlu1 %221 }
 0x19f   :  { %v171_v43 = vpop.f32.mrf.mxu2  ;;  %v247_v7 = vpop.f32.mrf.mxu0 }
 0x1a7   :  { %v282_v44 = vpop.f32.mrf.mxu2 }
 0x1a8   :  { %v285_v45 = vperm.slane %v282_v44, 0 }
 0x1aa   :  { %v286_v47 = vadd.f32 %v285_v45, %v261_v46 }
 0x1ac   :  { %v287_v48 = vsel %vm101_vm1, %v286_v47, -inf }
 0x1ad   :  { %v288_v49 = vsel %vm77_vm0, %v287_v48, -inf }
 0x1ae   :  { %289 = vmax.xlane.f32.xlu2 %v288_v49 }
 0x221   :  { %v290_v50 = vpop.xlane.xlu2 %289 }
 0x222   :  { %v291_v51 = vsub.f32 %v286_v47, %v290_v50 }
 0x224   :  { %v292_v52 = vsel %vm101_vm1, %v291_v51, -inf }
 0x225   :  { %v293_v53 = vmul.f32 1.442695, %v292_v52 }
 0x227   :  { %372 = vpow2.f32 %v293_v53 }
 0x228   :  { %374 = vrcp.f32 %v222_v57 }
 0x229   :  { %376 = vrcp.f32 %v146_v58 }
 0x22d   :  { %v373_v54 = vpop.eup %372 }
 0x22e   :  { %v295_v55 = vmul.f32 %v373_v54, %v74_v11  ;;  %v375_v59 = vpop.eup %374 }
 0x22f   :  { %v377_v60 = vpop.eup %376  ;;  %v224_v61 = vmul.f32 %v375_v59, %v222_v57 }
 0x230   :  { %362 = vmatmul.msk.f32.vlgmr.msrb.gmra.mxu1 %vm77_vm0, %v295_v55  ;;  %v296_v56 = vsel %vm77_vm0, %v295_v55, 0.0  ;;  %v148_v62 = vmul.f32 %v377_v60, %v146_v58 }
 0x231   :  { %297 = vadd.xlane.f32.xlu2 %v296_v56  ;;  %v225_v0 = vsub.f32 2.0, %v224_v61 }
 0x232   :  { %v149_v2 = vsub.f32 2.0, %v148_v62 }
 0x233   :  { %v226_v5 = vmul.f32 %v375_v59, %v225_v0 }
 0x234   :  { %v150_v6 = vmul.f32 %v377_v60, %v149_v2 }
 0x235   :  { %v250_v11 = vmul.f32 %v247_v7, %v226_v5 }
 0x236   :  { %v174_v9 = vmul.f32 %v171_v43, %v150_v6 }
 0x238   :  { %v180_v14 = vsel %vm176_vm6, %v174_v9, 0.0 }
 0x239   :  { %v256_v16 = vsel %vm253_vm7, %v250_v11, %v180_v14 }
 0x2a4   :  { %v298_v63 = vpop.xlane.xlu2 %297 }
 0x2a5   :  { %378 = vrcp.f32 %v298_v63 }
 0x2ab   :  { %v379_v3 = vpop.eup %378 }
 0x2ac   :  { %v300_v8 = vmul.f32 %v379_v3, %v298_v63 }
 0x2ad   :  { %v323_v13 = vpop.f32.mrf.mxu1 }
 0x2ae   :  { %v301_v10 = vsub.f32 2.0, %v300_v8 }
 0x2b0   :  { %v302_v12 = vmul.f32 %v379_v3, %v301_v10 }
 0x2b2   :  { %v326_v15 = vmul.f32 %v323_v13, %v302_v12 }
 0x2b4   :  { %v332_v17 = vsel %vm329_vm8, %v326_v15, %v256_v16 }
 0x2b5   :  { %333 = vst [vmem:[#allocation10] sm:$0xff] %v332_v17 }
 0x2b6   :  { %344 = dma.vmem_to_hbm [thread:$0]  %s340_s3, 128, %s342_s9, [#allocation4]  }
 0x2b7   :  { %506 = dma.done.wait [#allocation4], 128  }
 0x2b8   :  { %507 = vsyncadd [#allocation4], 4294967168 }
 0x2b9   :  { %349 = vsyncpa [#allocation3], 1 }
 0x2ba   :  { %350 = vsyncpa [#allocation6], 1 }
 0x2bb   :  { %351 = vsyncpa [#allocation9], 1 }
 0x2bc   :  { %352 = vsyncpa [#allocation4], 1 }

</bundles_post_ra>
